<compile_context>
chip_gen: v7x
topology: tpu7x:2x2x1
jax: 0.10.0
libtpu: 0.0.40
codegen_flags: <defaults>
</compile_context>

<pallas_src>
import functools

import jax
import jax.numpy as jnp
from jax.experimental import pallas as pl
from jax.experimental.pallas import tpu as pltpu

_EPS = 1e-8
_LANES = 128
_SUBLANES = 8
# Per-input *padded* block budget. 2 inputs x 2 pipeline buffers x 4 MiB = 16 MiB,
# covered by the explicit vmem_limit_bytes below (fits v5e/v6e 128 MiB and v7x
# 64 MiB physical VMEM with lots of headroom).
_BLOCK_BUDGET_BYTES = 4 * 1024 * 1024
_MIN_TOTAL_STEPS = 8   # enough grid steps to hide DMA and feed both v7x TCs

_PI = 3.141592653589793
_HALF_PI = 1.5707963267948966


def _round_up(x, m):
    return (x + m - 1) // m * m


def _sublane_pad(c, itemsize):
    """Channel count padded to the dtype's native sublane tile (8 f32 / 16 bf16 / 32 i8)."""
    packing = max(1, 4 // itemsize)
    return _round_up(c, _SUBLANES * packing)


def _asin_core(z):
    """Cephes asinf polynomial core: asin(z) for |z| <= 0.5 (f32 accuracy ~2e-7)."""
    z2 = z * z
    p = jnp.float32(4.2163199048e-2)
    p = p * z2 + jnp.float32(2.4181311049e-2)
    p = p * z2 + jnp.float32(4.5470025998e-2)
    p = p * z2 + jnp.float32(7.4953002686e-2)
    p = p * z2 + jnp.float32(1.6666752422e-1)
    return z + z * z2 * p


def _acos(x):
    """f32 arccos from mul/add/sqrt/select only (guaranteed Mosaic lowering)."""
    a = jnp.minimum(jnp.abs(x), jnp.float32(1.0))
    # |x| > 0.5:  acos(|x|) = 2*asin(sqrt((1-|x|)/2)); reflect for negative x.
    t = jnp.sqrt(jnp.float32(0.5) * (jnp.float32(1.0) - a))
    big = jnp.float32(2.0) * _asin_core(t)
    acos_big = jnp.where(x >= 0, big, jnp.float32(_PI) - big)
    # |x| <= 0.5: acos(x) = pi/2 - asin(x).
    acos_small = jnp.float32(_HALF_PI) - _asin_core(x)
    return jnp.where(a > jnp.float32(0.5), acos_big, acos_small)


def _sam_partial_kernel(sr_ref, hr_ref, sum_ref, cnt_ref, *, hw):
    """One (batch, hw-tile) block: channel-reduced cosine, masked acos partial sums."""
    sr = sr_ref[0].astype(jnp.float32)                      # (c, T), cast in-register
    hr = hr_ref[0].astype(jnp.float32)                      # (c, T)

    dot = jnp.sum(sr * hr, axis=0, keepdims=True)           # (1, T) sublane reduce
    n1 = jnp.sum(sr * sr, axis=0, keepdims=True)
    n2 = jnp.sum(hr * hr, axis=0, keepdims=True)
    # cos = dot / sqrt(max(n1*n2, eps^2)) via EUP rsqrt (F.cosine_similarity clamp).
    cos = dot * jax.lax.rsqrt(jnp.maximum(n1 * n2, jnp.float32(_EPS * _EPS)))

    t_hw = cos.shape[-1]
    lane = jax.lax.broadcasted_iota(jnp.int32, cos.shape, dimension=1)
    in_bounds = (pl.program_id(1) * t_hw + lane) < hw        # mask edge-tile pad lanes
    # NOTE: in f32 the +/- eps thresholds collapse to exactly +/-1.0, i.e. |cos| < 1,
    # which matches the f32 PyTorch reference behavior.
    in_range = jnp.logical_and(cos < jnp.float32(1.0 - _EPS),
                               cos > jnp.float32(-1.0 + _EPS))
    m = jnp.logical_and(in_range, in_bounds)

    s = jnp.sum(jnp.where(m, _acos(cos), jnp.float32(0.0)))
    cnt = jnp.sum(m.astype(jnp.float32))
    # Aligned (1, 1, 8, 128) lane-dense output blocks: scalar broadcast, unmasked store.
    sum_ref[...] = jnp.full(sum_ref.shape, s, dtype=jnp.float32)
    cnt_ref[...] = jnp.full(cnt_ref.shape, cnt, dtype=jnp.float32)


def _choose_hw_tile(hw, c_pad, itemsize, b):
    """Largest 128-multiple lane tile whose sublane-padded block fits the budget,
    capped so the grid has >= ~_MIN_TOTAL_STEPS steps for pipelining / megacore."""
    max_lanes = (_BLOCK_BUDGET_BYTES // (c_pad * itemsize)) // _LANES * _LANES
    max_lanes = max(max_lanes, _LANES)        # huge-c fallback; vmem_limit covers it
    steps_per_batch = max(1, pl.cdiv(_MIN_TOTAL_STEPS, b))
    lanes_for_steps = _round_up(pl.cdiv(hw, steps_per_batch), _LANES)
    t = max(min(max_lanes, lanes_for_steps), _LANES)
    if t >= hw:
        return hw                             # full lane extent: always a legal block dim
    return t


@jax.jit
def sam_loss(SR, HR):
    b, ch, h, w = HR.shape
    hw = h * w
    sr = SR.reshape(b, ch, hw)                # contiguous reshape: no extra HBM pass
    hr = HR.reshape(b, ch, hw)

    itemsize = jnp.dtype(sr.dtype).itemsize
    c_pad = _sublane_pad(ch, itemsize)
    t_hw = _choose_hw_tile(hw, c_pad, itemsize, b)
    n_hw = pl.cdiv(hw, t_hw)

    # True VMEM footprint: 2 inputs x 2 pipeline buffers of the sublane/lane-padded
    # block, plus the two tiny double-buffered (8,128) partial outputs, plus margin.
    block_bytes = c_pad * _round_up(t_hw, _LANES) * itemsize
    vmem_need = 2 * 2 * block_bytes + 2 * 2 * (_SUBLANES * _LANES * 4)
    vmem_limit = int(min(max(vmem_need + (2 << 20), 16 << 20), 64 << 20))

    part_sum, part_cnt = pl.pallas_call(
        functools.partial(_sam_partial_kernel, hw=hw),
        out_shape=(
            jax.ShapeDtypeStruct((b, n_hw, _SUBLANES, _LANES), jnp.float32),
            jax.ShapeDtypeStruct((b, n_hw, _SUBLANES, _LANES), jnp.float32),
        ),
        grid_spec=pltpu.PrefetchScalarGridSpec(
            num_scalar_prefetch=0,
            grid=(b, n_hw),
            in_specs=[
                pl.BlockSpec((1, ch, t_hw), lambda ib, it: (ib, 0, it)),
                pl.BlockSpec((1, ch, t_hw), lambda ib, it: (ib, 0, it)),
            ],
            out_specs=[
                pl.BlockSpec((1, 1, _SUBLANES, _LANES), lambda ib, it: (ib, it, 0, 0)),
                pl.BlockSpec((1, 1, _SUBLANES, _LANES), lambda ib, it: (ib, it, 0, 0)),
            ],
        ),
        compiler_params=pltpu.CompilerParams(
            dimension_semantics=("parallel", "parallel"),   # distinct out block per step
            vmem_limit_bytes=vmem_limit,
        ),
    )(sr, hr)

    total_sum = jnp.sum(part_sum[:, :, 0, 0])
    total_cnt = jnp.sum(part_cnt[:, :, 0, 0])
    # NaN when no pixel passes the mask — matches torch.mean over an empty selection.
    return total_sum / total_cnt


def _reference(SR, HR):
    """Plain-JAX mirror of the PyTorch SAMLoss forward."""
    b, c, h, w = HR.shape
    sr = SR.reshape(b, c, -1).astype(jnp.float32)
    hr = HR.reshape(b, c, -1).astype(jnp.float32)
    dot = jnp.sum(sr * hr, axis=1)
    denom = jnp.maximum(
        jnp.sqrt(jnp.sum(sr * sr, axis=1) * jnp.sum(hr * hr, axis=1)), _EPS)
    cos = dot / denom
    mask = jnp.logical_and(cos < 1.0 - _EPS, cos > -1.0 + _EPS)
    acos = jnp.arccos(jnp.clip(cos, -1.0, 1.0))
    return jnp.sum(jnp.where(mask, acos, 0.0)) / jnp.sum(mask)


if __name__ == "__main__":
    key = jax.random.PRNGKey(0)

    def _check(shape, dtype):
        nonlocal_key = jax.random.fold_in(key, hash(shape) & 0xFFFF)
        k1, k2 = jax.random.split(nonlocal_key)
        SR = jax.random.normal(k1, shape, dtype=jnp.float32).astype(dtype)
        HR = jax.random.normal(k2, shape, dtype=jnp.float32).astype(dtype)
        loss = jax.block_until_ready(sam_loss(SR, HR))
        ref = jax.block_until_ready(_reference(SR, HR))
        assert bool(jnp.isfinite(loss)), (shape, dtype, loss)
        assert jnp.allclose(loss, ref, rtol=1e-5, atol=1e-5), (shape, dtype, loss, ref)

    # Primary NCHW case (like the PyTorch module expects).
    _check((2, 4, 16, 16), jnp.float32)
    # Non-128-aligned spatial extent -> full-extent lane block path, c<8 sublane pad.
    _check((2, 3, 10, 10), jnp.float32)
    # b=1 with partial edge tile -> exercises the in-bounds lane masking path.
    _check((1, 3, 40, 40), jnp.float32)
    # bf16 inputs -> in-register cast + 16-row sublane padding path.
    _check((2, 4, 32, 32), jnp.bfloat16)

    print("KERNEL_OK")
</pallas_src>

<mosaic_0001>
module attributes {stable_mosaic.version = 11 : i64} {
  func.func @_sam_partial_kernel(%arg0: i32, %arg1: i32, %arg2: memref<1x4x128xf32, #tpu.memory_space<vmem>>, %arg3: memref<1x4x128xf32, #tpu.memory_space<vmem>>, %arg4: memref<1x1x8x128xf32, #tpu.memory_space<vmem>>, %arg5: memref<1x1x8x128xf32, #tpu.memory_space<vmem>>) attributes {dimension_semantics = [#tpu.dimension_semantics<parallel>, #tpu.dimension_semantics<parallel>], iteration_bounds = array<i64: 2, 2>, scalar_prefetch = 0 : i64, scratch_operands = 0 : i64, tpu.core_type = #tpu.core_type<tc>, window_params = [{transform_indices = @transform_0, window_bounds = array<i64: 1, 4, 128>}, {transform_indices = @transform_1, window_bounds = array<i64: 1, 4, 128>}, {transform_indices = @transform_2, window_bounds = array<i64: 1, 1, 8, 128>}, {transform_indices = @transform_3, window_bounds = array<i64: 1, 1, 8, 128>}]} {
    %c0 = arith.constant 0 : index
    %c0_0 = arith.constant 0 : index
    %c0_1 = arith.constant 0 : index
    %0 = vector.load %arg2[%c0, %c0_0, %c0_1] : memref<1x4x128xf32, #tpu.memory_space<vmem>>, vector<1x4x128xf32>
    %1 = vector.shape_cast %0 : vector<1x4x128xf32> to vector<4x128xf32>
    %c0_2 = arith.constant 0 : index
    %c0_3 = arith.constant 0 : index
    %c0_4 = arith.constant 0 : index
    %2 = vector.load %arg3[%c0_2, %c0_3, %c0_4] : memref<1x4x128xf32, #tpu.memory_space<vmem>>, vector<1x4x128xf32>
    %3 = vector.shape_cast %2 : vector<1x4x128xf32> to vector<4x128xf32>
    %4 = arith.mulf %1, %3 : vector<4x128xf32>
    %cst = arith.constant dense<0.000000e+00> : vector<128xf32>
    %5 = vector.multi_reduction <add>, %4, %cst [0] : vector<4x128xf32> to vector<128xf32>
    %6 = vector.shape_cast %5 : vector<128xf32> to vector<1x128xf32>
    %7 = arith.mulf %1, %1 : vector<4x128xf32>
    %cst_5 = arith.constant dense<0.000000e+00> : vector<128xf32>
    %8 = vector.multi_reduction <add>, %7, %cst_5 [0] : vector<4x128xf32> to vector<128xf32>
    %9 = vector.shape_cast %8 : vector<128xf32> to vector<1x128xf32>
    %10 = arith.mulf %3, %3 : vector<4x128xf32>
    %cst_6 = arith.constant dense<0.000000e+00> : vector<128xf32>
    %11 = vector.multi_reduction <add>, %10, %cst_6 [0] : vector<4x128xf32> to vector<128xf32>
    %12 = vector.shape_cast %11 : vector<128xf32> to vector<1x128xf32>
    %13 = arith.mulf %9, %12 : vector<1x128xf32>
    %cst_7 = arith.constant 1.000000e-16 : f32
    %14 = vector.broadcast %cst_7 : f32 to vector<1x128xf32>
    %15 = arith.maximumf %13, %14 : vector<1x128xf32>
    %16 = math.rsqrt %15 : vector<1x128xf32>
    %17 = arith.mulf %6, %16 : vector<1x128xf32>
    %18 = tpu.iota {dimensions = array<i32: 1>} : vector<1x128xi32>
    %c128_i32 = arith.constant 128 : i32
    %19 = arith.muli %arg1, %c128_i32 : i32
    %20 = vector.broadcast %19 : i32 to vector<1x128xi32>
    %21 = arith.addi %20, %18 : vector<1x128xi32>
    %c256_i32 = arith.constant 256 : i32
    %22 = vector.broadcast %c256_i32 : i32 to vector<1x128xi32>
    %23 = arith.cmpi slt, %21, %22 : vector<1x128xi32>
    %cst_8 = arith.constant 1.000000e+00 : f32
    %24 = vector.broadcast %cst_8 : f32 to vector<1x128xf32>
    %25 = arith.cmpf olt, %17, %24 : vector<1x128xf32>
    %cst_9 = arith.constant -1.000000e+00 : f32
    %26 = vector.broadcast %cst_9 : f32 to vector<1x128xf32>
    %27 = arith.cmpf ogt, %17, %26 : vector<1x128xf32>
    %28 = arith.andi %25, %27 : vector<1x128xi1>
    %29 = arith.andi %28, %23 : vector<1x128xi1>
    %30 = math.absf %17 : vector<1x128xf32>
    %cst_10 = arith.constant 1.000000e+00 : f32
    %31 = vector.broadcast %cst_10 : f32 to vector<1x128xf32>
    %32 = arith.minimumf %30, %31 : vector<1x128xf32>
    %cst_11 = arith.constant 1.000000e+00 : f32
    %33 = vector.broadcast %cst_11 : f32 to vector<1x128xf32>
    %34 = arith.subf %33, %32 : vector<1x128xf32>
    %cst_12 = arith.constant 5.000000e-01 : f32
    %35 = vector.broadcast %cst_12 : f32 to vector<1x128xf32>
    %36 = arith.mulf %35, %34 : vector<1x128xf32>
    %37 = math.sqrt %36 : vector<1x128xf32>
    %38 = arith.mulf %37, %37 : vector<1x128xf32>
    %cst_13 = arith.constant 4.216320e-02 : f32
    %39 = vector.broadcast %cst_13 : f32 to vector<1x128xf32>
    %40 = arith.mulf %39, %38 : vector<1x128xf32>
    %cst_14 = arith.constant 0.024181312 : f32
    %41 = vector.broadcast %cst_14 : f32 to vector<1x128xf32>
    %42 = arith.addf %40, %41 : vector<1x128xf32>
    %43 = arith.mulf %42, %38 : vector<1x128xf32>
    %cst_15 = arith.constant 0.0454700254 : f32
    %44 = vector.broadcast %cst_15 : f32 to vector<1x128xf32>
    %45 = arith.addf %43, %44 : vector<1x128xf32>
    %46 = arith.mulf %45, %38 : vector<1x128xf32>
    %cst_16 = arith.constant 0.0749530047 : f32
    %47 = vector.broadcast %cst_16 : f32 to vector<1x128xf32>
    %48 = arith.addf %46, %47 : vector<1x128xf32>
    %49 = arith.mulf %48, %38 : vector<1x128xf32>
    %cst_17 = arith.constant 0.166667521 : f32
    %50 = vector.broadcast %cst_17 : f32 to vector<1x128xf32>
    %51 = arith.addf %49, %50 : vector<1x128xf32>
    %52 = arith.mulf %37, %38 : vector<1x128xf32>
    %53 = arith.mulf %52, %51 : vector<1x128xf32>
    %54 = arith.addf %37, %53 : vector<1x128xf32>
    %cst_18 = arith.constant 2.000000e+00 : f32
    %55 = vector.broadcast %cst_18 : f32 to vector<1x128xf32>
    %56 = arith.mulf %55, %54 : vector<1x128xf32>
    %cst_19 = arith.constant 0.000000e+00 : f32
    %57 = vector.broadcast %cst_19 : f32 to vector<1x128xf32>
    %58 = arith.cmpf oge, %17, %57 : vector<1x128xf32>
    %cst_20 = arith.constant 3.14159274 : f32
    %59 = vector.broadcast %cst_20 : f32 to vector<1x128xf32>
    %60 = arith.subf %59, %56 : vector<1x128xf32>
    %61 = arith.select %58, %56, %60 : vector<1x128xi1>, vector<1x128xf32>
    %62 = arith.mulf %17, %17 : vector<1x128xf32>
    %cst_21 = arith.constant 4.216320e-02 : f32
    %63 = vector.broadcast %cst_21 : f32 to vector<1x128xf32>
    %64 = arith.mulf %63, %62 : vector<1x128xf32>
    %cst_22 = arith.constant 0.024181312 : f32
    %65 = vector.broadcast %cst_22 : f32 to vector<1x128xf32>
    %66 = arith.addf %64, %65 : vector<1x128xf32>
    %67 = arith.mulf %66, %62 : vector<1x128xf32>
    %cst_23 = arith.constant 0.0454700254 : f32
    %68 = vector.broadcast %cst_23 : f32 to vector<1x128xf32>
    %69 = arith.addf %67, %68 : vector<1x128xf32>
    %70 = arith.mulf %69, %62 : vector<1x128xf32>
    %cst_24 = arith.constant 0.0749530047 : f32
    %71 = vector.broadcast %cst_24 : f32 to vector<1x128xf32>
    %72 = arith.addf %70, %71 : vector<1x128xf32>
    %73 = arith.mulf %72, %62 : vector<1x128xf32>
    %cst_25 = arith.constant 0.166667521 : f32
    %74 = vector.broadcast %cst_25 : f32 to vector<1x128xf32>
    %75 = arith.addf %73, %74 : vector<1x128xf32>
    %76 = arith.mulf %17, %62 : vector<1x128xf32>
    %77 = arith.mulf %76, %75 : vector<1x128xf32>
    %78 = arith.addf %17, %77 : vector<1x128xf32>
    %cst_26 = arith.constant 1.57079637 : f32
    %79 = vector.broadcast %cst_26 : f32 to vector<1x128xf32>
    %80 = arith.subf %79, %78 : vector<1x128xf32>
    %cst_27 = arith.constant 5.000000e-01 : f32
    %81 = vector.broadcast %cst_27 : f32 to vector<1x128xf32>
    %82 = arith.cmpf ogt, %32, %81 : vector<1x128xf32>
    %83 = arith.select %82, %61, %80 : vector<1x128xi1>, vector<1x128xf32>
    %cst_28 = arith.constant 0.000000e+00 : f32
    %84 = vector.broadcast %cst_28 : f32 to vector<1x128xf32>
    %85 = arith.select %29, %83, %84 : vector<1x128xi1>, vector<1x128xf32>
    %86 = vector.shape_cast %85 : vector<1x128xf32> to vector<1x1x128xf32>
    %cst_29 = arith.constant dense<0.000000e+00> : vector<1xf32>
    %87 = vector.multi_reduction <add>, %86, %cst_29 [1, 2] : vector<1x1x128xf32> to vector<1xf32>
    %88 = vector.shape_cast %87 : vector<1xf32> to vector<1x1x1xf32>
    %89 = vector.extract %88[0, 0, 0] : f32 from vector<1x1x1xf32>
    %90 = arith.extui %29 : vector<1x128xi1> to vector<1x128xi32>
    %91 = arith.sitofp %90 : vector<1x128xi32> to vector<1x128xf32>
    %92 = vector.shape_cast %91 : vector<1x128xf32> to vector<1x1x128xf32>
    %cst_30 = arith.constant dense<0.000000e+00> : vector<1xf32>
    %93 = vector.multi_reduction <add>, %92, %cst_30 [1, 2] : vector<1x1x128xf32> to vector<1xf32>
    %94 = vector.shape_cast %93 : vector<1xf32> to vector<1x1x1xf32>
    %95 = vector.extract %94[0, 0, 0] : f32 from vector<1x1x1xf32>
    %96 = vector.broadcast %89 : f32 to vector<1x1x8x128xf32>
    %c0_31 = arith.constant 0 : index
    %c0_32 = arith.constant 0 : index
    %c0_33 = arith.constant 0 : index
    %c0_34 = arith.constant 0 : index
    %97 = vector.load %arg4[%c0_31, %c0_32, %c0_33, %c0_34] : memref<1x1x8x128xf32, #tpu.memory_space<vmem>>, vector<1x1x8x128xf32>
    tpu.vector_store %arg4[%c0_31, %c0_32, %c0_33, %c0_34], %96 {strides = array<i32>} : memref<1x1x8x128xf32, #tpu.memory_space<vmem>>, vector<1x1x8x128xf32>,
    %98 = vector.broadcast %95 : f32 to vector<1x1x8x128xf32>
    %c0_35 = arith.constant 0 : index
    %c0_36 = arith.constant 0 : index
    %c0_37 = arith.constant 0 : index
    %c0_38 = arith.constant 0 : index
    %99 = vector.load %arg5[%c0_35, %c0_36, %c0_37, %c0_38] : memref<1x1x8x128xf32, #tpu.memory_space<vmem>>, vector<1x1x8x128xf32>
    tpu.vector_store %arg5[%c0_35, %c0_36, %c0_37, %c0_38], %98 {strides = array<i32>} : memref<1x1x8x128xf32, #tpu.memory_space<vmem>>, vector<1x1x8x128xf32>,
    return
  }
  func.func @transform_0(%arg0: i32, %arg1: i32) -> (i32, i32, i32) {
    %c0_i32 = arith.constant 0 : i32
    %c0_i32_0 = arith.constant 0 : i32
    return %arg0, %c0_i32, %arg1 : i32, i32, i32
  }
  func.func @transform_1(%arg0: i32, %arg1: i32) -> (i32, i32, i32) {
    %c0_i32 = arith.constant 0 : i32
    %c0_i32_0 = arith.constant 0 : i32
    return %arg0, %c0_i32, %arg1 : i32, i32, i32
  }
  func.func @transform_2(%arg0: i32, %arg1: i32) -> (i32, i32, i32, i32) {
    %c0_i32 = arith.constant 0 : i32
    %c0_i32_0 = arith.constant 0 : i32
    %c0_i32_1 = arith.constant 0 : i32
    return %arg0, %arg1, %c0_i32, %c0_i32_0 : i32, i32, i32, i32
  }
  func.func @transform_3(%arg0: i32, %arg1: i32) -> (i32, i32, i32, i32) {
    %c0_i32 = arith.constant 0 : i32
    %c0_i32_0 = arith.constant 0 : i32
    %c0_i32_1 = arith.constant 0 : i32
    return %arg0, %arg1, %c0_i32, %c0_i32_0 : i32, i32, i32, i32
  }
}

</mosaic_0001>

<bundles_post_ra>
// kernel: sam_loss.1
= control target key start
LH: loop header
LB: loop body
LE: loop exit
PB: predicated region body
PF: predicated region fallthrough
CT: control target
= control target key end

     0   :  { %s643_s12 = smov 0   ;;  %s645_s13 = smov 0   ;;  %s709_s0 = inlined_call_operand.vmem [shape: f32[2,4,256], index: 0, kind: input, shape index: {}]   ;;  %s710_s1 = inlined_call_operand.vmem [shape: f32[2,4,256], index: 1, kind: input, shape index: {}]   ;;  %s711_s2 = inlined_call_operand.vmem [shape: f32[2,2,8,128], index: 2, kind: output, shape index: {0}]   ;;  %s712_s3 = inlined_call_operand.vmem [shape: f32[2,2,8,128], index: 3, kind: output, shape index: {1}]  }
   0x1   :  { %s647_s14 = smov 0   ;;  %s649_s15 = smov 0  }
   0x2   :  { %s651_s16 = smov 0  }
   0x3 LB: > { %s23_s17 = sadd.s32 1, %s612_s14  ;;  %s26_s18 = sadd.s32 1, %s616_s15  ;;  %s620_s16 = sphi %s651_s16, %s14_s16   ;;  %s616_s15 = sphi %s649_s15, %s716_s15   ;;  %s612_s14 = sphi %s647_s14, %s715_s14   ;;  %s608_s13 = sphi %s645_s13, %s714_s13   ;;  %s604_s12 = sphi %s643_s12, %s713_s12  }
   0x4   : > { %p24_p0 = scmp.ge.s32.totalorder %s23_s17, 2  ;;  %p520_p1 = scmp.ge.s32.totalorder %s620_s16, 1 }
   0x5   : > { %p176_p2 = scmp.lt.s32.totalorder %s620_s16, 5 }
   0x6   : > { %s718_s17 = smov (%p24_p0, %s23_s17), 0  ;;  %s720_s18 = smov (!%p24_p0, %s26_s18), %s616_s15 }
   0x7   : > { %p177_p3 = pnand %p520_p1, %p176_p2  ;;  %p28_p4 = scmp.ge.s32.totalorder %s720_s18, 2 }
   0x8   : > { %p222_p5 = scmp.lt.s32.totalorder (!%p177_p3), %s608_s13, 1  ;;  %p224_p6 = scmp.lt.s32.totalorder (!%p177_p3), %s604_s12, 1  ;;  %vm257_vm0 = vcmask (!%p177_p3), 1043456   ;;  %v285_v52 = vlaneseq (!%p177_p3)  ;;  %vm338_vm10 = vcmask (!%p177_p3), 1040384  }
   0x9   : > { %s722_s18 = smov (%p28_p4, %s720_s18), 0  ;;  %180 = sbr.rel (%p177_p3) target bundleno = 319 (0x13f), region = 28 }
   0xa   : > { %s529_s29 = sshll.u32 (!%p177_p3), %s604_s12, 7  ;;  %v286_v57 = vand.u32 (!%p177_p3), 127, %v285_v52 }
   0xb   : > { %v288_v60 = vstv (!%p177_p3), %s529_s29 }
   0xc   : > { %v289_v63 = vadd.s32 (!%p177_p3), %v288_v60, %v286_v57 }
   0xe   : > { %vm290_vm5 = vcmp.lt.s32.totalorder (!%p177_p3), %v289_v63, 256 }
  0x10   : > { %s724_s13 = smov (!%p222_p5, %s608_s13), 1 }
  0x11   : > { %s225_s19 = scalar_select %p224_p6, %s604_s12, 1 }
  0x12   : > { %s521_s20 = sshll.u32 %s724_s13, 1 }
  0x13   : > { %s677_s21 = sadd.s32 %s521_s20, %s225_s19 }
  0x14   : > { %s522_s22 = sshll.u32 %s677_s21, 2  ;;  %s526_s30 = sshll.u32 %s677_s21, 3 }
  0x15   : > { %s229_s25 = scalar_lea.vmem %s709_s0, %s522_s22  ;;  %s237_s28 = scalar_lea.vmem %s710_s1, %s522_s22 }
  0x16   : > { %v254_v0 = vld [vmem:[%s229_s25] sm:$0xf]  ;;  %s245_s6 = scalar_lea.vmem %s711_s2, %s526_s30  ;;  %s253_s10 = scalar_lea.vmem %s712_s3, %s526_s30 }
  0x17   : > { %v255_v1 = vld [vmem:[%s237_s28] sm:$0xf]  ;;  %v265_v3 = vmul.f32 %v254_v0, %v254_v0 }
  0x18   : > { %v256_v2 = vmul.f32 %v255_v1, %v254_v0  ;;  %v273_v4 = vmul.f32 %v255_v1, %v255_v1 }
  0x19   : > { %v266_v5 = vsel %vm257_vm0, %v265_v3, 0.0 }
  0x1a   : > { %v274_v6 = vsel %vm257_vm0, %v273_v4, 0.0  ;;  %v258_v7 = vsel %vm257_vm0, %v256_v2, 0.0  ;;  %v267_v8 = vrot.slane %v266_v5, 4 }
  0x1b   : > { %v275_v9 = vrot.slane %v274_v6, 4  ;;  %v259_v12 = vrot.slane %v258_v7, 4 }
  0x1c   : > { %v268_v10 = vadd.f32 %v267_v8, %v266_v5 }
  0x1d   : > { %v276_v11 = vadd.f32 %v275_v9, %v274_v6  ;;  %v260_v17 = vadd.f32 %v259_v12, %v258_v7  ;;  %v622_v9 = vmov 0.0  }
  0x1e   : > { %v269_v13 = vrot.slane %v268_v10, 2 }
  0x1f   : > { %v277_v14 = vrot.slane %v276_v11, 2  ;;  %v261_v22 = vrot.slane %v260_v17, 2 }
  0x20   : > { %v270_v15 = vadd.f32 %v269_v13, %v268_v10 }
  0x21   : > { %v278_v16 = vadd.f32 %v277_v14, %v276_v11  ;;  %v262_v25 = vadd.f32 %v261_v22, %v260_v17 }
  0x22   : > { %v271_v18 = vrot.slane %v270_v15, 1 }
  0x23   : > { %v279_v19 = vrot.slane %v278_v16, 1  ;;  %v263_v26 = vrot.slane %v262_v25, 1 }
  0x24   : > { %v272_v20 = vadd.f32 %v271_v18, %v270_v15 }
  0x25   : > { %v280_v21 = vadd.f32 %v279_v19, %v278_v16  ;;  %v264_v27 = vadd.f32 %v263_v26, %v262_v25 }
  0x27   : > { %v281_v23 = vmul.f32 %v280_v21, %v272_v20 }
  0x29   : > { %v282_v24 = vmax.f32 %v281_v23, 1e-16 }
  0x2b   : > { %578 = vrsqrt.f32 %v282_v24 }
  0x35   : > { %v579_v28 = vpop.eup %578 }
  0x36   : > { %v284_v29 = vmul.f32 %v579_v28, %v264_v27 }
  0x38   : > { %v295_v30 = vand.u32 2147483647, %v284_v29  ;;  %v322_v32 = vmul.f32 %v284_v29, %v284_v29  ;;  %vm291_vm3 = vcmp.lt.f32.partialorder %v284_v29, 1.0  ;;  %vm292_vm4 = vcmp.gt.f32.partialorder %v284_v29, -1.0 }
  0x39   : > { %vm293_vm6 = vmand %vm291_vm3, %vm292_vm4  ;;  %vm319_vm7 = vcmp.ge.f32.partialorder %v284_v29, 0.0 }
  0x3a   : > { %v296_v31 = vmin.f32 %v295_v30, 1.0  ;;  %v323_v35 = vmul.f32 0.0421632, %v322_v32  ;;  %v331_v55 = vmul.f32 %v322_v32, %v284_v29  ;;  %vm294_vm9 = vmand %vm293_vm6, %vm290_vm5 }
  0x3b   : > { %v530_v10 = vsel %vm294_vm9, 1.0, %v622_v9 }
  0x3c   : > { %v297_v33 = vsub.f32 1.0, %v296_v31  ;;  %v324_v36 = vadd.f32 0.024181312, %v323_v35  ;;  %vm335_vm8 = vcmp.gt.f32.partialorder %v296_v31, 0.5  ;;  %v351_v12 = vsel %vm338_vm10, %v530_v10, 0.0 }
  0x3e   : > { %v298_v34 = vmul.f32 0.5, %v297_v33  ;;  %v325_v37 = vmul.f32 %v324_v36, %v322_v32 }
  0x40   : > { %580 = vrsqrt.f32 %v298_v34  ;;  %vm301_vm1 = vcmp.eq.f32.partialorder %v298_v34, inf  ;;  %v304_v39 = vand.u32 2147483648, %v298_v34  ;;  %v326_v40 = vadd.f32 0.045470025, %v325_v37 }
  0x41   : > { %vm303_vm2 = vcmp.eq.f32.partialorder %v298_v34, 0.0 }
  0x42   : > { %v327_v44 = vmul.f32 %v326_v40, %v322_v32 }
  0x44   : > { %v328_v47 = vadd.f32 0.074953005, %v327_v44 }
  0x46   : > { %v329_v50 = vmul.f32 %v328_v47, %v322_v32 }
  0x48   : > { %v330_v54 = vadd.f32 0.16666752, %v329_v50 }
  0x4a   : > { %v581_v38 = vpop.eup %580  ;;  %v332_v61 = vmul.f32 %v331_v55, %v330_v54 }
  0x4b   : > { %v300_v41 = vmul.f32 %v581_v38, %v298_v34 }
  0x4c   : > { %v333_v1 = vadd.f32 %v332_v61, %v284_v29 }
  0x4d   : > { %v302_v42 = vsel %vm301_vm1, %v298_v34, %v300_v41 }
  0x4e   : > { %v305_v43 = vsel %vm303_vm2, %v304_v39, %v302_v42  ;;  %v334_v4 = vsub.f32 1.5707964, %v333_v1 }
  0x4f   : > { %v306_v45 = vmul.f32 %v305_v43, %v305_v43 }
  0x51   : > { %v307_v46 = vmul.f32 0.0421632, %v306_v45  ;;  %v315_v59 = vmul.f32 %v306_v45, %v305_v43 }
  0x53   : > { %v308_v48 = vadd.f32 0.024181312, %v307_v46 }
  0x55   : > { %v309_v49 = vmul.f32 %v308_v48, %v306_v45 }
  0x57   : > { %v310_v51 = vadd.f32 0.045470025, %v309_v49 }
  0x59   : > { %v311_v53 = vmul.f32 %v310_v51, %v306_v45 }
  0x5b   : > { %v312_v56 = vadd.f32 0.074953005, %v311_v53 }
  0x5d   : > { %v313_v58 = vmul.f32 %v312_v56, %v306_v45 }
  0x5f   : > { %v314_v62 = vadd.f32 0.16666752, %v313_v58 }
  0x61   : > { %v316_v0 = vmul.f32 %v315_v59, %v314_v62 }
  0x63   : > { %v317_v2 = vadd.f32 %v316_v0, %v305_v43 }
  0x65   : > { %v318_v3 = vmul.f32 2.0, %v317_v2 }
  0x67   : > { %v320_v5 = vsub.f32 3.1415927, %v318_v3 }
  0x69   : > { %v321_v6 = vsel %vm319_vm7, %v318_v3, %v320_v5 }
  0x6a   : > { %v336_v7 = vsel %vm335_vm8, %v321_v6, %v334_v4 }
  0x6b   : > { %v337_v8 = vsel %vm294_vm9, %v336_v7, 0.0 }
  0x6c   : > { %v339_v11 = vsel %vm338_vm10, %v337_v8, 0.0 }
  0x6d   : > { %340 = vadd.xlane.f32.xlu0 %v339_v11 }
  0x71   : > { %352 = vadd.xlane.f32.xlu0 %v351_v12 }
  0xfa   : > { %v341_v13 = vpop.xlane.xlu0 %340 }
  0xfb   : > { %v342_v14 = vrot.slane %v341_v13, 4 }
  0xfd   : > { %v343_v15 = vadd.f32 %v342_v14, %v341_v13 }
  0xfe   : > { %v353_v16 = vpop.xlane.xlu0 %352 }
  0xff   : > { %v344_v17 = vrot.slane %v343_v15, 2  ;;  %v354_v18 = vrot.slane %v353_v16, 4 }
 0x101   : > { %v355_v19 = vadd.f32 %v354_v18, %v353_v16  ;;  %v345_v20 = vadd.f32 %v344_v17, %v343_v15 }
 0x103   : > { %v356_v21 = vrot.slane %v355_v19, 2  ;;  %v346_v22 = vrot.slane %v345_v20, 1 }
 0x105   : > { %v357_v23 = vadd.f32 %v356_v21, %v355_v19  ;;  %v347_v24 = vadd.f32 %v346_v22, %v345_v20 }
 0x107   : > { %533 = vpush %v347_v24  ;;  %v358_v25 = vrot.slane %v357_v23, 1 }
 0x109   : > { %v359_v26 = vadd.f32 %v358_v25, %v357_v23 }
 0x10b   : > { %535 = vpush %v359_v26 }
 0x138   : > { %s534_s7 = spop %533 }
 0x139   : > { %v361_v27 = vstv %s534_s7 }
 0x13a   : > { %362 = vst [vmem:[%s245_s6] sm:$0xff] %v361_v27 }
 0x13c   : > { %s536_s11 = spop %535 }
 0x13d   : > { %v363_v28 = vstv %s536_s11 }
 0x13e   : > { %364 = vst [vmem:[%s253_s10] sm:$0xff] %v363_v28 }
 0x13f PF: > { %s14_s16 = sadd.s32 1, %s620_s16   ;;  %s713_s12 = smov %s612_s14 }
 0x140   : > { %p11_p7 = scmp.ge.s32.totalorder %s14_s16, 6   ;;  %s714_s13 = smov %s616_s15 }
 0x141   : > { %s715_s14 = smov %s718_s17  ;;  %s716_s15 = smov %s722_s18 }
 0x142   :  { %13 = sbr.rel (!%p11_p7) target bundleno = 3 (0x3), region = 73 }

</bundles_post_ra>
